<compile_context>
chip_gen: v5e
topology: v5e:2x2
jax: 0.10.0
libtpu: 0.0.40
codegen_flags: <defaults>
</compile_context>

<pallas_src>
import jax
import jax.numpy as jnp
from jax import lax
from jax.experimental import pallas as pl
from jax.experimental.pallas import tpu as pltpu


# ---------------------------------------------------------------------------
# Pallas kernel: elementwise negate (the only real work this layer ever does)
# ---------------------------------------------------------------------------
def _negate_kernel(g_ref, o_ref):
    o_ref[...] = -g_ref[...]


_LANE_WIDTHS = (4096, 2048, 1024, 512, 256, 128)   # widest first
_SUBLANE_ALIGN = {4: 8, 2: 16, 1: 32}              # itemsize -> row alignment


def _tile_budget_bytes():
    """Per-generation tile byte budget and optional scoped-VMEM override.

    Double-buffered in+out needs ~4x the tile size of VMEM.
    """
    try:
        kind = jax.devices()[0].device_kind.lower()
    except Exception:
        kind = ""
    if "v6" in kind:
        # 4 MiB tile -> 16 MiB working set, fits v6e's 32 MiB scoped default.
        return 4 * 1024 * 1024, None
    if "7" in kind:
        # 8 MiB tile -> 32 MiB working set; raise scoped VMEM (64 MiB physical).
        return 8 * 1024 * 1024, 48 * 1024 * 1024
    # v5e / v5p / v4 / unknown: 2 MiB tile -> 8 MiB, fits the 16 MiB default.
    return 2 * 1024 * 1024, None


def _run_negate(g):
    """Negate `g` with a row-tiled, lane-dense, pipelined Pallas kernel."""
    orig_shape = g.shape
    total = int(g.size)
    itemsize = jnp.dtype(g.dtype).itemsize

    # Widest lane-dense width that exactly divides the element count.
    lanes = next((w for w in _LANE_WIDTHS if total >= w and total % w == 0), None)
    if total == 0 or lanes is None:
        # Non-128-aligned gradient: skip Pallas; a single fusible elementwise
        # HLO beats pad + kernel + slice (no extra full-tensor HBM copies).
        return jnp.negative(g)

    rows = total // lanes
    sub = _SUBLANE_ALIGN.get(itemsize, 8)
    tile_bytes, vmem_limit = _tile_budget_bytes()
    budget_rows = max(sub, (tile_bytes // (lanes * itemsize)) // sub * sub)

    if rows < 2 * sub:
        # Tiny: single full-extent block (exempt from the (8,128) rule).
        tile_r = rows
    else:
        # Guarantee >= 2 blocks so the "parallel" grid axis can shard across
        # v7x's two TensorCores, capped at the per-generation byte budget.
        half = pl.cdiv(pl.cdiv(rows, 2), sub) * sub
        tile_r = min(budget_rows, half)

    grid = (pl.cdiv(rows, tile_r),)
    g2d = g.reshape(rows, lanes)

    cp_kwargs = dict(dimension_semantics=("parallel",))
    if vmem_limit is not None:
        cp_kwargs["vmem_limit_bytes"] = vmem_limit

    out2d = pl.pallas_call(
        _negate_kernel,
        out_shape=jax.ShapeDtypeStruct((rows, lanes), g.dtype),
        grid=grid,
        in_specs=[pl.BlockSpec((tile_r, lanes), lambda i: (i, 0))],
        out_specs=pl.BlockSpec((tile_r, lanes), lambda i: (i, 0)),
        input_output_aliases={0: 0},  # in-place: no separate output HBM buffer
        compiler_params=pltpu.CompilerParams(**cp_kwargs),
        cost_estimate=pl.CostEstimate(
            flops=total, transcendentals=0,
            bytes_accessed=2 * total * itemsize),
    )(g2d)

    return out2d.reshape(orig_shape)


# ---------------------------------------------------------------------------
# custom_vjp: identity forward, sign-conditional backward
# ---------------------------------------------------------------------------
@jax.custom_vjp
def _grad_sign_flip(x, sign):
    # forward: identity (no kernel, no HBM traffic)
    return x


def _grad_sign_flip_fwd(x, sign):
    return x, sign


def _grad_sign_flip_bwd(sign, g):
    # Only launch the negate kernel when the flip actually fired (~p of the
    # time); otherwise pass the gradient through untouched.
    grad_x = lax.cond(sign < 0.0, _run_negate, lambda a: a, g)
    return grad_x, jnp.zeros_like(sign)


_grad_sign_flip.defvjp(_grad_sign_flip_fwd, _grad_sign_flip_bwd)


def label_noise_layer(x, probability=0.1, training=False, key=None):
    """Forward: identity. Backward: with prob `probability` (training only),
    the gradient is negated (label-noise gradient flip)."""
    if not training:
        # Eval mode: identity forward AND identity backward -> no kernels.
        return x
    if key is None:
        raise ValueError("training=True requires an explicit JAX PRNG key")
    flip = jax.random.uniform(key, ()) < probability
    sign = jnp.where(flip, -1.0, 1.0).astype(jnp.float32)
    return _grad_sign_flip(x, sign)


# ---------------------------------------------------------------------------
# Demo
# ---------------------------------------------------------------------------
if __name__ == "__main__":
    key = jax.random.PRNGKey(0)
    # NCHW like PyTorch: batch=2, channels=4, spatial=16x16
    x = jax.random.normal(key, (2, 4, 16, 16), dtype=jnp.float32)

    # 1) Run the Pallas negate kernel directly once (single-block path).
    neg = jax.block_until_ready(_run_negate(x))
    assert neg.shape == x.shape and neg.dtype == x.dtype
    assert bool(jnp.allclose(neg, -x)), "negate kernel must flip sign"

    # 1b) Multi-block path (grid >= 2) on a slightly larger slab.
    x_big = jax.random.normal(jax.random.PRNGKey(3), (2, 8, 64, 64), jnp.float32)
    neg_big = jax.block_until_ready(_run_negate(x_big))
    assert bool(jnp.allclose(neg_big, -x_big)), "multi-block negate must match"

    # 1c) Non-128-aligned fallback (pure jnp, no pad/slice copies).
    x_odd = jax.random.normal(jax.random.PRNGKey(4), (3, 5, 7), jnp.float32)
    neg_odd = jax.block_until_ready(_run_negate(x_odd))
    assert bool(jnp.allclose(neg_odd, -x_odd)), "fallback negate must match"

    # 2) Forward is identity (training and eval).
    y_train = jax.block_until_ready(
        label_noise_layer(x, 0.1, True, jax.random.PRNGKey(1)))
    assert bool(jnp.allclose(y_train, x)), "forward must be identity"
    y_eval = label_noise_layer(x, 0.1, False, None)
    assert bool(jnp.allclose(y_eval, x)), "forward must be identity"

    # 3) Backward, eval mode: gradient passes through unchanged (no kernel).
    g_eval = jax.grad(
        lambda a: jnp.sum(label_noise_layer(a, 0.1, False, None)))(x)
    assert bool(jnp.allclose(g_eval, jnp.ones_like(x)))

    # 4) Backward, training, probability=1.0: always flips -> gradient is -1.
    g_flip = jax.block_until_ready(jax.grad(
        lambda a: jnp.sum(label_noise_layer(a, 1.0, True,
                                            jax.random.PRNGKey(1))))(x))
    assert bool(jnp.allclose(g_flip, -jnp.ones_like(x)))

    # 5) Backward, training, probability=0.0: never flips -> gradient is +1.
    g_keep = jax.grad(
        lambda a: jnp.sum(label_noise_layer(a, 0.0, True,
                                            jax.random.PRNGKey(2))))(x)
    assert bool(jnp.allclose(g_keep, jnp.ones_like(x)))

    print("KERNEL_OK")
</pallas_src>

<mosaic_0001>
module attributes {stable_mosaic.version = 11 : i64} {
  func.func @_negate_kernel(%arg0: i32, %arg1: memref<1x2048xf32, #tpu.memory_space<vmem>>, %arg2: memref<1x2048xf32, #tpu.memory_space<vmem>>) attributes {dimension_semantics = [#tpu.dimension_semantics<parallel>], iteration_bounds = array<i64: 1>, scalar_prefetch = 0 : i64, scratch_operands = 0 : i64, tpu.core_type = #tpu.core_type<tc>, window_params = [{transform_indices = @transform_0, window_bounds = array<i64: 1, 2048>}, {transform_indices = @transform_1, window_bounds = array<i64: 1, 2048>}]} {
    %c0 = arith.constant 0 : index
    %c0_0 = arith.constant 0 : index
    %0 = vector.load %arg1[%c0, %c0_0] : memref<1x2048xf32, #tpu.memory_space<vmem>>, vector<1x2048xf32>
    %cst = arith.constant 0.000000e+00 : f32
    %1 = vector.broadcast %cst : f32 to vector<1x2048xf32>
    %2 = arith.subf %1, %0 : vector<1x2048xf32>
    %c0_1 = arith.constant 0 : index
    %c0_2 = arith.constant 0 : index
    %3 = vector.load %arg2[%c0_1, %c0_2] : memref<1x2048xf32, #tpu.memory_space<vmem>>, vector<1x2048xf32>
    tpu.vector_store %arg2[%c0_1, %c0_2], %2 {strides = array<i32>} : memref<1x2048xf32, #tpu.memory_space<vmem>>, vector<1x2048xf32>,
    return
  }
  func.func @transform_0(%arg0: i32) -> (i32, i32) {
    %c0_i32 = arith.constant 0 : i32
    %c0_i32_0 = arith.constant 0 : i32
    return %arg0, %c0_i32 : i32, i32
  }
  func.func @transform_1(%arg0: i32) -> (i32, i32) {
    %c0_i32 = arith.constant 0 : i32
    %c0_i32_0 = arith.constant 0 : i32
    return %arg0, %c0_i32 : i32, i32
  }
}

</mosaic_0001>

<bundles_post_ra>
// kernel: tpu_custom_call.1
= control target key start
LH: loop header
LB: loop body
LE: loop exit
PB: predicated region body
PF: predicated region fallthrough
CT: control target
= control target key end

     0   :  { %6 = vsyncpa [#allocation3], 0  ;;  %s118_s0 = inlined_call_operand.hbm [shape: f32[1,2048], index: 0, kind: input, shape index: {}, may-alias: {0,1}]   ;;  %s119_s1 = inlined_call_operand.hbm [shape: f32[1,2048], index: 1, kind: output, shape index: {}, may-alias: {0,1}]  }
   0x1   :  { %7 = vsyncpa [#allocation4], 0  ;;  %s13_s8 = sshll.u32 %s118_s0, 4  ;;  %s100_s9 = smov [#allocation2]   ;;  %s14_s8 = int_to_ptr.hbm [resolvable:$true] %s13_s8 }
   0x2   :  { %s15_s10 = sshll.u32 %s100_s9, 4  ;;  %s16_s10 = int_to_ptr.vmem [resolvable:$true] %s15_s10 }
   0x3   :  { %18 = dma.hbm_to_vmem [thread:$0]  %s14_s8, 256, %s16_s10, [#allocation3]  }
   0x4   :  { %96 = dma.done.wait [#allocation3], 256  }
   0x5   :  { %97 = vsyncadd [#allocation3], 4294967040  ;;  %s101_s11 = smov [#allocation5]   ;;  %s36_s15 = sshll.u32 %s119_s1, 4  ;;  %v23_v0 = vld [vmem:[#allocation2] sm:$0xff]  ;;  %v24_v1 = vld [vmem:[#allocation2 + $0x8] sm:$0xff]  ;;  %s37_s15 = int_to_ptr.hbm [resolvable:$true] %s36_s15 }
   0x6   :  { %s34_s12 = sshll.u32 %s101_s11, 4  ;;  %v25_v2 = vsub.f32 0.0, %v23_v0  ;;  %v26_v3 = vsub.f32 0.0, %v24_v1  ;;  %s35_s12 = int_to_ptr.vmem [resolvable:$true] %s34_s12 }
   0x8   :  { %27 = vst [vmem:[#allocation5] sm:$0xff] %v25_v2 }
   0x9   :  { %28 = vst [vmem:[#allocation5 + $0x8] sm:$0xff] %v26_v3 }
   0xa   :  { %39 = dma.vmem_to_hbm [thread:$0]  %s35_s12, 256, %s37_s15, [#allocation4]  }
   0xb   :  { %98 = dma.done.wait [#allocation4], 256  }
   0xc   :  { %99 = vsyncadd [#allocation4], 4294967040 }
   0xd   :  { %44 = vsyncpa [#allocation3], 1 }
   0xe   :  { %45 = vsyncpa [#allocation4], 1 }

</bundles_post_ra>
